<compile_context>
chip_gen: v6e
topology: v6e:2x2x1
jax: 0.10.0
libtpu: 0.0.40
codegen_flags: <defaults>
</compile_context>

<pallas_src>
import jax
import jax.numpy as jnp
from jax.experimental import pallas as pl
from jax.experimental.pallas import tpu as pltpu


def valuenet_kernel(x_ref, w1_ref, b1_ref, w2_ref, b2_ref, w3_ref, b3_ref, o_ref):
    # x_ref: (S, TB) lane-dense (batch on lanes).
    # w1: (64, S), b1: (64, 1), w2: (32, 64), b2: (32, 1), w3: (1, 32), b3: (1, 1)
    x = x_ref[...]

    # h1 = W1 @ x -> (64, TB)   (MXU)
    h1 = jnp.dot(w1_ref[...], x, preferred_element_type=jnp.float32)
    h1 = jnp.maximum(h1 + b1_ref[...], 0.0)

    # h2 = W2 @ h1 -> (32, TB)  (MXU)
    h2 = jnp.dot(w2_ref[...], h1, preferred_element_type=jnp.float32)
    h2 = jnp.maximum(h2 + b2_ref[...], 0.0)

    # fc3 on the MXU as a 1-row matmul: (1, 32) @ (32, TB) -> (1, TB)
    out = jnp.dot(w3_ref[...], h2, preferred_element_type=jnp.float32) + b3_ref[...]
    o_ref[...] = out  # (1, TB) wide unmasked store (masked only on the ragged tail)


def value_net_forward(x, params, *, tb=32768):
    """x: (B, state_dim) f32 -> (B, 1) f32."""
    w1, b1, w2, b2, w3, b3 = params
    B, S = x.shape

    # Lane-dense delivery of x: batch on the lane axis.
    # TODO(synk): fuse this transpose into the producer of x to avoid the extra
    # HBM round-trip of x when it matters.
    xt = x.T  # (S, B)

    # Tile sizing:
    #  * round tb up to a lane multiple,
    #  * when the whole batch fits in one tile, split it in two so grid >= 2 and
    #    the "parallel" axis can shard across v7x's two TensorCores.
    tb = max(128, pl.cdiv(tb, 128) * 128)
    if B <= tb:
        tb = max(128, pl.cdiv(pl.cdiv(B, 2), 128) * 128)
    grid = (pl.cdiv(B, tb),)

    weight_specs = [
        pl.BlockSpec(w1.shape, lambda i: (0, 0)),
        pl.BlockSpec(b1.shape, lambda i: (0, 0)),
        pl.BlockSpec(w2.shape, lambda i: (0, 0)),
        pl.BlockSpec(b2.shape, lambda i: (0, 0)),
        pl.BlockSpec(w3.shape, lambda i: (0, 0)),
        pl.BlockSpec(b3.shape, lambda i: (0, 0)),
    ]

    flops = 2 * B * (S * 64 + 64 * 32 + 32)
    weight_bytes = 4 * sum(int(p.size) for p in (w1, b1, w2, b2, w3, b3))
    bytes_accessed = int(B) * (S + 1) * 4 + weight_bytes

    out = pl.pallas_call(
        valuenet_kernel,
        out_shape=jax.ShapeDtypeStruct((1, B), jnp.float32),
        grid_spec=pltpu.PrefetchScalarGridSpec(
            num_scalar_prefetch=0,
            grid=grid,
            in_specs=[pl.BlockSpec((S, tb), lambda i: (0, i))] + weight_specs,
            out_specs=pl.BlockSpec((1, tb), lambda i: (0, i)),
        ),
        compiler_params=pltpu.CompilerParams(
            dimension_semantics=("parallel",),       # batch tiles shard across TCs on v7x
            vmem_limit_bytes=48 * 1024 * 1024,       # fits v7x's 64 MiB VMEM with headroom
        ),
        cost_estimate=pl.CostEstimate(
            flops=flops, transcendentals=0, bytes_accessed=bytes_accessed),
    )(xt, w1, b1, w2, b2, w3, b3)

    return out[0].reshape(B, 1)


def init_params(key, state_dim):
    """PyTorch nn.Linear-style init (U[-1/sqrt(fan_in), +1/sqrt(fan_in)]).

    Weights kept in PyTorch (out_features, in_features) layout; biases as
    (out, 1) columns so they broadcast over the lane (batch) axis in-kernel.
    """
    dims = [(state_dim, 64), (64, 32), (32, 1)]
    raw = []
    for fan_in, fan_out in dims:
        key, kw, kb = jax.random.split(key, 3)
        bound = 1.0 / (fan_in ** 0.5)
        w = jax.random.uniform(kw, (fan_out, fan_in), jnp.float32, -bound, bound)
        b = jax.random.uniform(kb, (fan_out, 1), jnp.float32, -bound, bound)
        raw += [w, b]
    w1, b1, w2, b2, w3, b3 = raw
    return (w1, b1, w2, b2, w3, b3)   # w3 stays (1, 32) for the MXU fc3


def reference_forward(x, params):
    w1, b1, w2, b2, w3, b3 = params
    h = jnp.maximum(x @ w1.T + b1.T, 0.0)
    h = jnp.maximum(h @ w2.T + b2.T, 0.0)
    return h @ w3.T + b3.T


if __name__ == "__main__":
    state_dim = 8          # LunarLander-v3 observation dim
    batch = 8

    key = jax.random.PRNGKey(0)
    key, kx = jax.random.split(key)
    x = jax.random.normal(kx, (batch, state_dim), dtype=jnp.float32)
    params = init_params(key, state_dim)

    out = value_net_forward(x, params)
    jax.block_until_ready(out)
    ref = reference_forward(x, params)
    assert out.shape == (batch, 1)
    assert jnp.allclose(out, ref, atol=1e-5, rtol=1e-5)

    # Exercise the multi-tile grid + ragged last tile (no wrapper pad): 500 with
    # tb=256 -> grid=(2,), second tile covers rows 256..499 with masked OOB writes.
    key, kx2 = jax.random.split(key)
    x2 = jax.random.normal(kx2, (500, state_dim), dtype=jnp.float32)
    out2 = value_net_forward(x2, params, tb=256)
    jax.block_until_ready(out2)
    ref2 = reference_forward(x2, params)
    assert out2.shape == (500, 1)
    assert jnp.allclose(out2, ref2, atol=1e-5, rtol=1e-5)

    print("KERNEL_OK")
</pallas_src>

<mosaic_0001>
module attributes {stable_mosaic.version = 11 : i64} {
  func.func @valuenet_kernel(%arg0: i32, %arg1: memref<8x128xf32, #tpu.memory_space<vmem>>, %arg2: memref<64x8xf32, #tpu.memory_space<vmem>>, %arg3: memref<64x1xf32, #tpu.memory_space<vmem>>, %arg4: memref<32x64xf32, #tpu.memory_space<vmem>>, %arg5: memref<32x1xf32, #tpu.memory_space<vmem>>, %arg6: memref<1x32xf32, #tpu.memory_space<vmem>>, %arg7: memref<1x1xf32, #tpu.memory_space<vmem>>, %arg8: memref<1x128xf32, #tpu.memory_space<vmem>>) attributes {dimension_semantics = [#tpu.dimension_semantics<parallel>], iteration_bounds = array<i64: 1>, scalar_prefetch = 0 : i64, scratch_operands = 0 : i64, tpu.core_type = #tpu.core_type<tc>, window_params = [{transform_indices = @transform_0, window_bounds = array<i64: 8, 128>}, {pipeline_mode = #tpu.pipeline_mode<synchronous>, transform_indices = @transform_1, window_bounds = array<i64: 64, 8>}, {pipeline_mode = #tpu.pipeline_mode<synchronous>, transform_indices = @transform_2, window_bounds = array<i64: 64, 1>}, {pipeline_mode = #tpu.pipeline_mode<synchronous>, transform_indices = @transform_3, window_bounds = array<i64: 32, 64>}, {pipeline_mode = #tpu.pipeline_mode<synchronous>, transform_indices = @transform_4, window_bounds = array<i64: 32, 1>}, {pipeline_mode = #tpu.pipeline_mode<synchronous>, transform_indices = @transform_5, window_bounds = array<i64: 1, 32>}, {pipeline_mode = #tpu.pipeline_mode<synchronous>, transform_indices = @transform_6, window_bounds = array<i64: 1, 1>}, {transform_indices = @transform_7, window_bounds = array<i64: 1, 128>}]} {
    %c0 = arith.constant 0 : index
    %c0_0 = arith.constant 0 : index
    %0 = vector.load %arg1[%c0, %c0_0] : memref<8x128xf32, #tpu.memory_space<vmem>>, vector<8x128xf32>
    %c0_1 = arith.constant 0 : index
    %c0_2 = arith.constant 0 : index
    %1 = vector.load %arg2[%c0_1, %c0_2] : memref<64x8xf32, #tpu.memory_space<vmem>>, vector<64x8xf32>
    %cst = arith.constant dense<0.000000e+00> : vector<64x128xf32>
    %2 = tpu.matmul %1, %0, %cst {dimension_numbers = #tpu.dot_dimension_numbers<[1], [0], [0], [1], [0, 0, 1, 1], [], []>} : vector<64x8xf32>, vector<8x128xf32>, vector<64x128xf32> -> vector<64x128xf32>
    %c0_3 = arith.constant 0 : index
    %c0_4 = arith.constant 0 : index
    %3 = vector.load %arg3[%c0_3, %c0_4] : memref<64x1xf32, #tpu.memory_space<vmem>>, vector<64x1xf32>
    %4 = vector.broadcast %3 : vector<64x1xf32> to vector<64x128xf32>
    %5 = arith.addf %2, %4 : vector<64x128xf32>
    %cst_5 = arith.constant 0.000000e+00 : f32
    %6 = vector.broadcast %cst_5 : f32 to vector<64x128xf32>
    %7 = arith.maximumf %5, %6 : vector<64x128xf32>
    %c0_6 = arith.constant 0 : index
    %c0_7 = arith.constant 0 : index
    %8 = vector.load %arg4[%c0_6, %c0_7] : memref<32x64xf32, #tpu.memory_space<vmem>>, vector<32x64xf32>
    %cst_8 = arith.constant dense<0.000000e+00> : vector<32x128xf32>
    %9 = tpu.matmul %8, %7, %cst_8 {dimension_numbers = #tpu.dot_dimension_numbers<[1], [0], [0], [1], [0, 0, 1, 1], [], []>} : vector<32x64xf32>, vector<64x128xf32>, vector<32x128xf32> -> vector<32x128xf32>
    %c0_9 = arith.constant 0 : index
    %c0_10 = arith.constant 0 : index
    %10 = vector.load %arg5[%c0_9, %c0_10] : memref<32x1xf32, #tpu.memory_space<vmem>>, vector<32x1xf32>
    %11 = vector.broadcast %10 : vector<32x1xf32> to vector<32x128xf32>
    %12 = arith.addf %9, %11 : vector<32x128xf32>
    %cst_11 = arith.constant 0.000000e+00 : f32
    %13 = vector.broadcast %cst_11 : f32 to vector<32x128xf32>
    %14 = arith.maximumf %12, %13 : vector<32x128xf32>
    %c0_12 = arith.constant 0 : index
    %c0_13 = arith.constant 0 : index
    %15 = vector.load %arg6[%c0_12, %c0_13] : memref<1x32xf32, #tpu.memory_space<vmem>>, vector<1x32xf32>
    %cst_14 = arith.constant dense<0.000000e+00> : vector<1x128xf32>
    %16 = tpu.matmul %15, %14, %cst_14 {dimension_numbers = #tpu.dot_dimension_numbers<[1], [0], [0], [1], [0, 0, 1, 1], [], []>} : vector<1x32xf32>, vector<32x128xf32>, vector<1x128xf32> -> vector<1x128xf32>
    %c0_15 = arith.constant 0 : index
    %c0_16 = arith.constant 0 : index
    %17 = vector.load %arg7[%c0_15, %c0_16] : memref<1x1xf32, #tpu.memory_space<vmem>>, vector<1x1xf32>
    %18 = vector.broadcast %17 : vector<1x1xf32> to vector<1x128xf32>
    %19 = arith.addf %16, %18 : vector<1x128xf32>
    %c0_17 = arith.constant 0 : index
    %c0_18 = arith.constant 0 : index
    %20 = vector.load %arg8[%c0_17, %c0_18] : memref<1x128xf32, #tpu.memory_space<vmem>>, vector<1x128xf32>
    tpu.vector_store %arg8[%c0_17, %c0_18], %19 {strides = array<i32>} : memref<1x128xf32, #tpu.memory_space<vmem>>, vector<1x128xf32>,
    return
  }
  func.func @transform_0(%arg0: i32) -> (i32, i32) {
    %c0_i32 = arith.constant 0 : i32
    %c0_i32_0 = arith.constant 0 : i32
    return %c0_i32, %arg0 : i32, i32
  }
  func.func @transform_1(%arg0: i32) -> (i32, i32) {
    %c0_i32 = arith.constant 0 : i32
    %c0_i32_0 = arith.constant 0 : i32
    %c0_i32_1 = arith.constant 0 : i32
    return %c0_i32, %c0_i32_0 : i32, i32
  }
  func.func @transform_2(%arg0: i32) -> (i32, i32) {
    %c0_i32 = arith.constant 0 : i32
    %c0_i32_0 = arith.constant 0 : i32
    %c0_i32_1 = arith.constant 0 : i32
    return %c0_i32, %c0_i32_0 : i32, i32
  }
  func.func @transform_3(%arg0: i32) -> (i32, i32) {
    %c0_i32 = arith.constant 0 : i32
    %c0_i32_0 = arith.constant 0 : i32
    %c0_i32_1 = arith.constant 0 : i32
    return %c0_i32, %c0_i32_0 : i32, i32
  }
  func.func @transform_4(%arg0: i32) -> (i32, i32) {
    %c0_i32 = arith.constant 0 : i32
    %c0_i32_0 = arith.constant 0 : i32
    %c0_i32_1 = arith.constant 0 : i32
    return %c0_i32, %c0_i32_0 : i32, i32
  }
  func.func @transform_5(%arg0: i32) -> (i32, i32) {
    %c0_i32 = arith.constant 0 : i32
    %c0_i32_0 = arith.constant 0 : i32
    %c0_i32_1 = arith.constant 0 : i32
    return %c0_i32, %c0_i32_0 : i32, i32
  }
  func.func @transform_6(%arg0: i32) -> (i32, i32) {
    %c0_i32 = arith.constant 0 : i32
    %c0_i32_0 = arith.constant 0 : i32
    %c0_i32_1 = arith.constant 0 : i32
    return %c0_i32, %c0_i32_0 : i32, i32
  }
  func.func @transform_7(%arg0: i32) -> (i32, i32) {
    %c0_i32 = arith.constant 0 : i32
    %c0_i32_0 = arith.constant 0 : i32
    return %c0_i32, %arg0 : i32, i32
  }
}

</mosaic_0001>

<bundles_post_ra>
// kernel: tpu_custom_call.1
= control target key start
LH: loop header
LB: loop body
LE: loop exit
PB: predicated region body
PF: predicated region fallthrough
CT: control target
= control target key end

     0   :  { %s708_s0 = inlined_call_operand.vmem [shape: f32[8,8], index: 0, kind: input, shape index: {}]   ;;  %s709_s1 = inlined_call_operand.vmem [shape: f32[64,8], index: 1, kind: input, shape index: {}]   ;;  %s710_s2 = inlined_call_operand.vmem [shape: f32[64,1], index: 2, kind: input, shape index: {}]   ;;  %s711_s3 = inlined_call_operand.vmem [shape: f32[32,64], index: 3, kind: input, shape index: {}]   ;;  %s712_s4 = inlined_call_operand.vmem [shape: f32[32,1], index: 4, kind: input, shape index: {}]   ;;  %s713_s5 = inlined_call_operand.vmem [shape: f32[1,32], index: 5, kind: input, shape index: {}]   ;;  %s714_s6 = inlined_call_operand.<no memory space> [shape: f32[1,1], index: 6, kind: input, shape index: {}]   ;;  %s715_s7 = inlined_call_operand.hbm [shape: f32[1,8], index: 7, kind: output, shape index: {}]  }
   0x1   :  { %v12_v0 = vstv %s714_s6 }
   0x2   :  { %13 = vst [vmem:[#allocation2] sm:$0x1] %v12_v0 }
   0x3   :  { %v29_v1 = vld [vmem:[%s708_s0] sm:$0xff]  ;;  %vm86_vm0 = vcmask 64512   ;;  %v31_v3 = vld [vmem:[%s709_s1 + $0x8] sm:$0xff]  ;;  %v32_v4 = vld [vmem:[%s709_s1 + $0x10] sm:$0xff]  ;;  %v568_v5 = vmov 0  }
   0x4   :  { %v30_v2 = vld [vmem:[%s709_s1] sm:$0xff]  ;;  %493 = vmatprep.subr.mxu0 %v29_v1  ;;  %544 = vset.pattern.permute.xlu0 %v568_v5  ;;  %v45_v6 = vld [vmem:[%s710_s2 + $0x38] sm:$0xff]  ;;  %v43_v7 = vld [vmem:[%s710_s2 + $0x28] sm:$0xff] }
   0x5   :  { %495 = vmatprep.mubr.msk.f32.mxu0 %vm86_vm0, %v30_v2  ;;  %494 = vmatpush3.msra.mxu0 %v29_v1  ;;  %v33_v8 = vld [vmem:[%s709_s1 + $0x18] sm:$0xff]  ;;  %v34_v9 = vld [vmem:[%s709_s1 + $0x20] sm:$0xff]  ;;  %v44_v10 = vld [vmem:[%s710_s2 + $0x30] sm:$0xff] }
   0x6   :  { %496 = vmatmul.mubr.msk.f32.vlgmr.msra.gmra.mxu0 %vm86_vm0, %v31_v3  ;;  %545 = vset.pattern.permute.xlu1 %v568_v5  ;;  %v42_v11 = vld [vmem:[%s710_s2 + $0x20] sm:$0xff] }
   0x7   :  { %498 = vmatprep.mubr.msk.f32.mxu0 %vm86_vm0, %v32_v4  ;;  %83 = vperm.xlu0 %544, %v45_v6  }
   0x8   :  { %73 = vperm.xlu1 %545, %v43_v7  }
   0xa   :  { %499 = vmatmul.mubr.msk.f32.gmra.mxu0 %vm86_vm0, %v33_v8 }
   0xb   :  { %14 = vsyncpa [#allocation4], 0  ;;  %501 = vmatprep.mubr.msk.f32.mxu0 %vm86_vm0, %v34_v9  ;;  %v35_v12 = vld [vmem:[%s709_s1 + $0x28] sm:$0xff]  ;;  %78 = vperm.xlu0 %544, %v44_v10   ;;  %v36_v13 = vld [vmem:[%s709_s1 + $0x30] sm:$0xff]  ;;  %vm252_vm1 = vcmask 523264   ;;  %v569_v60 = vmov 0.0  }
   0xc   :  { %68 = vperm.xlu1 %545, %v42_v11   ;;  %v41_v14 = vld [vmem:[%s710_s2 + $0x18] sm:$0xff]  ;;  %v40_v15 = vld [vmem:[%s710_s2 + $0x10] sm:$0xff]  ;;  %v39_v17 = vld [vmem:[%s710_s2 + $0x8] sm:$0xff]  ;;  %529 = vmatprep.subr.mxu0 %v569_v60  ;;  %vm570_vm2 = vmmov 0   ;;  %vm365_vm3 = vcmask 261120   ;;  %s571_s24 = smov [#allocation3]  }
   0xd   :  { %v37_v16 = vld [vmem:[%s709_s1 + $0x38] sm:$0xff]  ;;  %v38_v18 = vld [vmem:[%s710_s2] sm:$0xff]  ;;  %v230_v20 = vld [vmem:[%s712_s4 + $0x10] sm:$0xff]  ;;  %s446_s25 = sshll.u32 %s571_s24, 4  ;;  %s447_s25 = int_to_ptr.vmem [resolvable:$true] %s446_s25 }
   0xe   :  { %502 = vmatmul.mubr.msk.f32.gmra.mxu0 %vm86_vm0, %v35_v12  ;;  %v231_v19 = vld [vmem:[%s712_s4 + $0x18] sm:$0xff]  ;;  %v229_v21 = vld [vmem:[%s712_s4 + $0x8] sm:$0xff]  ;;  %v228_v22 = vld [vmem:[%s712_s4] sm:$0xff]  ;;  %s546_s26 = scalar_lea.vmem %s447_s25, 16  ;;  %s550_s27 = scalar_lea.vmem %s447_s25, 32 }
   0xf   :  { %504 = vmatprep.mubr.msk.f32.mxu0 %vm86_vm0, %v36_v13  ;;  %63 = vperm.xlu0 %544, %v41_v14   ;;  %v355_v23 = vld [vmem:[#allocation2] sm:$0x1]  ;;  %v225_v57 = vld [vmem:[%s711_s3 + $0x8] sm:$0xff]  ;;  %v226_v58 = vld [vmem:[%s711_s3 + $0x10] sm:$0xff]  ;;  %v361_v14 = vlaneseq  ;;  %p547_p0 = scmp.ne.s32.totalorder %s447_s25, %s546_s26  ;;  %p551_p1 = scmp.lt.s32.totalorder %s447_s25, %s447_s25 }
  0x10   :  { %58 = vperm.xlu1 %545, %v40_v15   ;;  %v224_v24 = vld [vmem:[%s711_s3] sm:$0xff]  ;;  %v227_v59 = vld [vmem:[%s711_s3 + $0x18] sm:$0xff]  ;;  %p552_p2 = scmp.lt.s32.totalorder %s550_s27, %s546_s26 }
  0x11   :  { %523 = vmatprep.mubr.msk.f32.mxu1 %vm252_vm1, %v224_v24  ;;  %v354_v13 = vld [vmem:[%s713_s5] sm:$0x1]  ;;  %v362_v15 = vshrl.u32 %v361_v14, 7 }
  0x12   :  { %505 = vmatmul.mubr.msk.f32.gmra.mxu0 %vm86_vm0, %v37_v16  ;;  %p553_p3 = por %p552_p2, %p551_p1 }
  0x13   :  { %53 = vperm.xlu0 %544, %v39_v17   ;;  %537 = vmatprep.mubr.msk.f32.mxu0 %vm570_vm2, %v569_v60  ;;  %v363_v16 = vsub.s32 0, %v362_v15 }
  0x14   :  { %48 = vperm.xlu1 %545, %v38_v18   ;;  %p554_p4 = pnand %p553_p3, %p547_p0 }
  0x17   :  { %249 = vperm.xlu0 %544, %v231_v19  }
  0x18   :  { %244 = vperm.xlu1 %545, %v230_v20  }
  0x1b   :  { %239 = vperm.xlu0 %544, %v229_v21  }
  0x1c   :  { %234 = vperm.xlu1 %545, %v228_v22  }
  0x1f   :  { %358 = vperm.xlu0 %544, %v355_v23  }
  0x82   :  { %v84_v27 = vpop.permute.xlu0 %83 }
  0x83   :  { %v74_v28 = vpop.permute.xlu1 %73 }
  0x86   :  { %v79_v32 = vpop.permute.xlu0 %78 }
  0x87   :  { %v69_v33 = vpop.permute.xlu1 %68 }
  0x8a   :  { %v64_v41 = vpop.permute.xlu0 %63 }
  0x8b   :  { %v59_v42 = vpop.permute.xlu1 %58 }
  0x8e   :  { %v54_v49 = vpop.permute.xlu0 %53 }
  0x8f   :  { %v49_v50 = vpop.permute.xlu1 %48 }
  0x92   :  { %v250_v61 = vpop.permute.xlu0 %249 }
  0x93   :  { %v245_v63 = vpop.permute.xlu1 %244 }
  0x96   :  { %v240_v3 = vpop.permute.xlu0 %239 }
  0x97   :  { %v235_v8 = vpop.permute.xlu1 %234 }
  0x9a   :  { %v359_v17 = vpop.permute.xlu0 %358 }
  0x9b   :  { %v364_v18 = vrot.slane %v359_v17, %v363_v16 }
  0xc6   :  { %v497_v25 = vpop.f32.mrf.mxu0 }
  0xc7   :  { %v183_v51 = vadd.f32 %v497_v25, %v54_v49 }
  0xc8   :  { %v177_v26 = vpop.f32.mrf.mxu0 }
  0xc9   :  { %v178_v53 = vadd.f32 %v177_v26, %v49_v50  ;;  %v217_v55 = vmax.f32 %v183_v51, 0.0 }
  0xca   :  { %v500_v29 = vpop.f32.mrf.mxu0 }
  0xcb   :  { %v193_v45 = vadd.f32 %v500_v29, %v64_v41  ;;  %v216_v56 = vmax.f32 %v178_v53, 0.0 }
  0xcc   :  { %v187_v30 = vpop.f32.mrf.mxu0 }
  0xcd   :  { %v188_v47 = vadd.f32 %v187_v30, %v59_v42  ;;  %v219_v52 = vmax.f32 %v193_v45, 0.0 }
  0xce   :  { %v503_v31 = vpop.f32.mrf.mxu0 }
  0xcf   :  { %v203_v38 = vadd.f32 %v503_v31, %v74_v28  ;;  %v218_v54 = vmax.f32 %v188_v47, 0.0 }
  0xd0   :  { %v197_v34 = vpop.f32.mrf.mxu0 }
  0xd1   :  { %v198_v43 = vadd.f32 %v197_v34, %v69_v33  ;;  %v221_v46 = vmax.f32 %v203_v38, 0.0 }
  0xd2   :  { %v506_v35 = vpop.f32.mrf.mxu0 }
  0xd3   :  { %v213_v36 = vadd.f32 %v506_v35, %v84_v27  ;;  %v220_v48 = vmax.f32 %v198_v43, 0.0 }
  0xd4   :  { %v207_v37 = vpop.f32.mrf.mxu0 }
  0xd5   :  { %v223_v39 = vmax.f32 %v213_v36, 0.0  ;;  %v208_v40 = vadd.f32 %v207_v37, %v79_v32 }
  0xd7   :  { %v222_v44 = vmax.f32 %v208_v40, 0.0  ;;  %507 = vmatprep.subr.mxu1 %v223_v39 }
  0xd8   :  { %508 = vmatpush3.msra.mxu1 %v223_v39 }
  0xd9   :  { %509 = vmatprep.subr.mxu1 %v222_v44 }
  0xda   :  { %510 = vmatpush3.msra.mxu1 %v222_v44 }
  0xdb   :  { %511 = vmatprep.subr.mxu1 %v221_v46 }
  0xdc   :  { %512 = vmatpush3.msra.mxu1 %v221_v46 }
  0xdd   :  { %513 = vmatprep.subr.mxu1 %v220_v48 }
  0xde   :  { %514 = vmatpush3.msra.mxu1 %v220_v48 }
  0xdf   :  { %515 = vmatprep.subr.mxu1 %v219_v52 }
  0xe0   :  { %516 = vmatpush3.msra.mxu1 %v219_v52 }
  0xe1   :  { %517 = vmatprep.subr.mxu1 %v218_v54 }
  0xe2   :  { %518 = vmatpush3.msra.mxu1 %v218_v54 }
  0xe3   :  { %519 = vmatprep.subr.mxu1 %v217_v55 }
  0xe4   :  { %520 = vmatpush3.msra.mxu1 %v217_v55 }
  0xe5   :  { %521 = vmatprep.subr.mxu1 %v216_v56 }
  0xe6   :  { %522 = vmatpush3.msra.mxu1 %v216_v56 }
  0xe7   :  { %524 = vmatmul.mubr.msk.f32.vlgmr.msra.gmra.mxu1 %vm252_vm1, %v225_v57 }
  0xe8   :  { %526 = vmatprep.mubr.msk.f32.mxu1 %vm252_vm1, %v226_v58 }
  0xeb   :  { %527 = vmatmul.mubr.msk.f32.gmra.mxu1 %vm252_vm1, %v227_v59 }
 0x1a7   :  { %v525_v62 = vpop.f32.mrf.mxu1 }
 0x1a8   :  { %v337_v5 = vadd.f32 %v525_v62, %v240_v3 }
 0x1a9   :  { %v331_v0 = vpop.f32.mrf.mxu1 }
 0x1aa   :  { %v332_v9 = vadd.f32 %v331_v0, %v235_v8  ;;  %v351_v11 = vmax.f32 %v337_v5, 0.0 }
 0x1ab   :  { %v528_v1 = vpop.f32.mrf.mxu1 }
 0x1ac   :  { %v347_v2 = vadd.f32 %v528_v1, %v250_v61  ;;  %v350_v12 = vmax.f32 %v332_v9, 0.0 }
 0x1ad   :  { %v341_v4 = vpop.f32.mrf.mxu1 }
 0x1ae   :  { %v353_v6 = vmax.f32 %v347_v2, 0.0  ;;  %v342_v7 = vadd.f32 %v341_v4, %v245_v63 }
 0x1b0   :  { %v352_v10 = vmax.f32 %v342_v7, 0.0  ;;  %530 = vmatpush3.msra.mxu0 %v353_v6 }
 0x1b1   :  { %531 = vmatprep.subr.mxu0 %v569_v60 }
 0x1b2   :  { %532 = vmatpush3.msra.mxu0 %v352_v10 }
 0x1b3   :  { %533 = vmatprep.subr.mxu0 %v569_v60 }
 0x1b4   :  { %534 = vmatpush3.msra.mxu0 %v351_v11 }
 0x1b5   :  { %535 = vmatprep.subr.mxu0 %v569_v60 }
 0x1b6   :  { %536 = vmatpush3.msra.mxu0 %v350_v12 }
 0x1b7   :  { %538 = vmatmul.mubr.msk.f32.vlgmr.msra.gmra.mxu0 %vm365_vm3, %v354_v13 }
 0x277   :  { %v435_v19 = vpop.f32.mrf.mxu0 }
 0x278   :  { %v436_v20 = vadd.f32 %v435_v19, %v364_v18 }
 0x279   :  { %v539_v21 = vpop.f32.mrf.mxu0 }
 0x27a   :  { %439 = vst [vmem:[#allocation3] sm:$0x1] %v436_v20 }
 0x27b   :  { %557 = shalt.err (!%p554_p4)
}
 0x27c   :  { %449 = dma.vmem_to_hbm [thread:$0]  %s447_s25, 16, %s715_s7, [#allocation4]  }
 0x27d   :  { %566 = dma.done.wait [#allocation4], 16  }
 0x27e   :  { %567 = vsyncadd [#allocation4], 4294967280 }
 0x27f   :  { %453 = vsyncpa [#allocation4], 1 }

</bundles_post_ra>
